<compile_context>
chip_gen: v7x
topology: tpu7x:2x2x1
jax: 0.10.0
libtpu: 0.0.40
codegen_flags: <defaults>
</compile_context>

<pallas_src>
import jax
import jax.numpy as jnp
from jax.experimental import pallas as pl
from jax.experimental.pallas import tpu as pltpu

IN_DIM = 784      # dense0 fan-in (28*28); full last dim of x, streamed unpadded
PAD_H = 128       # hidden (num_units=10) and output (10) dims padded to lane width
TAIL_ROWS = 272   # rows 0..2: b0/b1/b2, rows 16:144: W1 slab, rows 144:272: W2 slab
NEG_BIG = -1e30   # softmax mask value for padded logit lanes
TB_MAX = 1024     # max batch rows per grid step (f32 x block stays well in VMEM)


def _mlp_softmax_kernel(x_ref, w0_ref, tail_ref, o_ref):
    """One batch tile of the fused MLP + softmax.

    x_ref:    [TB, 784]  f32   (cast to bf16 in-kernel; HBM read stays f32)
    w0_ref:   [784, 128] bf16  (dense0 weight, zero padded to 128 lanes)
    tail_ref: [272, 128] bf16  packed: row0=b0, row1=b1, row2=b2 (-1e30 pad),
                               rows 16:144 = W1 slab, rows 144:272 = W2 slab
    o_ref:    [TB, 128]  bf16  (softmax probs; lanes >= 10 are exactly 0)
    """
    x = x_ref[...].astype(jnp.bfloat16)

    b0 = tail_ref[0:1, :].astype(jnp.float32)
    b1 = tail_ref[1:2, :].astype(jnp.float32)
    b2 = tail_ref[2:3, :].astype(jnp.float32)
    w1 = tail_ref[16:144, :]
    w2 = tail_ref[144:272, :]

    # dense0 + ReLU (bf16 MXU, f32 accumulation)
    h0 = jnp.dot(x, w0_ref[...], preferred_element_type=jnp.float32) + b0
    h0 = jnp.maximum(h0, 0.0)

    # dropout(p=0.5): identity in eval/inference mode.
    # TODO(synk): training-mode dropout would need pltpu.prng_seed + prng_random_bits masking.

    # dense1 + ReLU
    h1 = jnp.dot(h0.astype(jnp.bfloat16), w1, preferred_element_type=jnp.float32) + b1
    h1 = jnp.maximum(h1, 0.0)

    # output + numerically stable softmax along the last axis.
    # Padded lanes carry bias -1e30 -> exp underflows to 0 -> they contribute
    # nothing to the denominator and the stored probability there is 0.
    logits = jnp.dot(h1.astype(jnp.bfloat16), w2, preferred_element_type=jnp.float32) + b2
    m = jnp.max(logits, axis=-1, keepdims=True)
    e = jnp.exp(logits - m)
    denom = jnp.sum(e, axis=-1, keepdims=True)
    o_ref[...] = (e / denom).astype(o_ref.dtype)   # exact divide; kernel is mem-bound


def pack_params(raw):
    """Pack the 6 tiny PyTorch-style tensors into 2 lane-padded bf16 operands."""
    w0, b0 = raw["w0"], raw["b0"].reshape(-1)
    w1, b1 = raw["w1"], raw["b1"].reshape(-1)
    w2, b2 = raw["w2"], raw["b2"].reshape(-1)
    nu = w0.shape[1]          # num_units
    nh = w1.shape[1]          # 10
    no = w2.shape[1]          # 10 output classes

    w0p = jnp.zeros((IN_DIM, PAD_H), jnp.float32)
    w0p = w0p.at[:, :nu].set(w0).astype(jnp.bfloat16)

    tail = jnp.zeros((TAIL_ROWS, PAD_H), jnp.float32)
    tail = tail.at[0, :nu].set(b0)
    tail = tail.at[1, :nh].set(b1)
    tail = tail.at[2, :].set(NEG_BIG)                    # mask padded logit lanes
    tail = tail.at[2, :no].set(b2)
    tail = tail.at[16:16 + nu, :nh].set(w1)              # W1: [nu, 10], 16-row aligned
    tail = tail.at[144:144 + w2.shape[0], :no].set(w2)   # W2: [10, 10], 16-row aligned
    return w0p, tail.astype(jnp.bfloat16)                # bf16: -1e30 keeps f32 exponent range


def _tile_rows(batch: int) -> int:
    """Batch rows per grid step: multiple of 8 (16 when tiled); >= 2 tiles when the
    batch is big enough so both v7x TensorCores get work; capped at TB_MAX."""
    b8 = ((batch + 7) // 8) * 8
    if b8 <= 32:                                   # tiny batch: one tile
        return b8
    half = (((batch + 1) // 2) + 15) // 16 * 16    # ceil(batch/2) -> multiple of 16
    return min(TB_MAX, half)


@jax.jit
def my_module_forward(x, w0p, tail):
    """x: [B, 784] float32. Returns [B, 10] softmax probabilities (float32)."""
    B = x.shape[0]
    TB = _tile_rows(B)
    grid = pl.cdiv(B, TB)   # partial final tile allowed: rows are independent,
                            # OOB rows never touch valid output and are dropped.

    out = pl.pallas_call(
        _mlp_softmax_kernel,
        out_shape=jax.ShapeDtypeStruct((B, PAD_H), jnp.bfloat16),
        grid_spec=pltpu.PrefetchScalarGridSpec(
            num_scalar_prefetch=0,
            grid=(grid,),
            in_specs=[
                pl.BlockSpec((TB, IN_DIM), lambda i: (i, 0)),        # stream x (f32)
                pl.BlockSpec((IN_DIM, PAD_H), lambda i: (0, 0)),     # resident W0
                pl.BlockSpec((TAIL_ROWS, PAD_H), lambda i: (0, 0)),  # resident tail
            ],
            out_specs=pl.BlockSpec((TB, PAD_H), lambda i: (i, 0)),
        ),
        compiler_params=pltpu.CompilerParams(
            dimension_semantics=("parallel",),        # shard batch tiles across TCs (v7x)
            vmem_limit_bytes=32 * 1024 * 1024,        # explicit for v5e's 16 MiB default
        ),
    )(x, w0p, tail)

    return out[:, :10].astype(jnp.float32)


def init_params(key, num_units=10):
    """PyTorch nn.Linear default init: U(-1/sqrt(fan_in), 1/sqrt(fan_in)).
       Weights stored pre-transposed as [in, out]; then packed for the kernel."""
    def linear(k, fan_in, fan_out):
        kw, kb = jax.random.split(k)
        bound = 1.0 / jnp.sqrt(fan_in)
        w = jax.random.uniform(kw, (fan_in, fan_out), jnp.float32, -bound, bound)
        b = jax.random.uniform(kb, (fan_out,), jnp.float32, -bound, bound)
        return w, b

    k0, k1, k2 = jax.random.split(key, 3)
    w0, b0 = linear(k0, 784, num_units)   # dense0: 784 -> num_units
    w1, b1 = linear(k1, num_units, 10)    # dense1: num_units -> 10
    w2, b2 = linear(k2, 10, 10)           # output: 10 -> 10
    raw = dict(w0=w0, b0=b0, w1=w1, b1=b1, w2=w2, b2=b2)
    w0p, tail = pack_params(raw)
    return dict(w0p=w0p, tail=tail, raw=raw)


def reference_forward(x, raw):
    h0 = jnp.maximum(x @ raw["w0"] + raw["b0"], 0.0)
    h1 = jnp.maximum(h0 @ raw["w1"] + raw["b1"], 0.0)
    return jax.nn.softmax(h1 @ raw["w2"] + raw["b2"], axis=-1)


if __name__ == "__main__":
    key = jax.random.PRNGKey(0)
    k_params, k_x = jax.random.split(key)

    params = init_params(k_params, num_units=10)
    X = jax.random.normal(k_x, (8, 784), dtype=jnp.float32)  # batch=8, features=784

    out = my_module_forward(X, params["w0p"], params["tail"])
    out = jax.block_until_ready(out)

    # sanity: shape, finite, rows sum to ~1 (exact normalize, bf16 storage rounding
    # of 10 lanes bounds the sum error well below 5e-3), matches f32 reference.
    assert out.shape == (8, 10)
    assert bool(jnp.all(jnp.isfinite(out)))
    assert jnp.allclose(jnp.sum(out, axis=-1), 1.0, atol=5e-3)
    ref = reference_forward(X, params["raw"])
    assert jnp.allclose(out, ref, atol=2e-2)

    print("KERNEL_OK")
</pallas_src>

<mosaic_0001>
module attributes {stable_mosaic.version = 11 : i64} {
  func.func @_mlp_softmax_kernel(%arg0: i32, %arg1: memref<8x784xf32, #tpu.memory_space<vmem>>, %arg2: memref<784x128xbf16, #tpu.memory_space<vmem>>, %arg3: memref<272x128xbf16, #tpu.memory_space<vmem>>, %arg4: memref<8x128xbf16, #tpu.memory_space<vmem>>) attributes {dimension_semantics = [#tpu.dimension_semantics<parallel>], iteration_bounds = array<i64: 1>, scalar_prefetch = 0 : i64, scratch_operands = 0 : i64, tpu.core_type = #tpu.core_type<tc>, window_params = [{transform_indices = @transform_0, window_bounds = array<i64: 8, 784>}, {pipeline_mode = #tpu.pipeline_mode<synchronous>, transform_indices = @transform_1, window_bounds = array<i64: 784, 128>}, {pipeline_mode = #tpu.pipeline_mode<synchronous>, transform_indices = @transform_2, window_bounds = array<i64: 272, 128>}, {transform_indices = @transform_3, window_bounds = array<i64: 8, 128>}]} {
    %c0 = arith.constant 0 : index
    %c0_0 = arith.constant 0 : index
    %0 = vector.load %arg1[%c0, %c0_0] : memref<8x784xf32, #tpu.memory_space<vmem>>, vector<8x784xf32>
    %1 = arith.truncf %0 : vector<8x784xf32> to vector<8x784xbf16>
    %c0_1 = arith.constant 0 : index
    %c0_2 = arith.constant 0 : index
    %2 = vector.load %arg3[%c0_1, %c0_2] : memref<272x128xbf16, #tpu.memory_space<vmem>>, vector<1x128xbf16>
    %3 = arith.extf %2 : vector<1x128xbf16> to vector<1x128xf32>
    %c1 = arith.constant 1 : index
    %c0_3 = arith.constant 0 : index
    %4 = vector.load %arg3[%c1, %c0_3] : memref<272x128xbf16, #tpu.memory_space<vmem>>, vector<1x128xbf16>
    %5 = arith.extf %4 : vector<1x128xbf16> to vector<1x128xf32>
    %c2 = arith.constant 2 : index
    %c0_4 = arith.constant 0 : index
    %6 = vector.load %arg3[%c2, %c0_4] : memref<272x128xbf16, #tpu.memory_space<vmem>>, vector<1x128xbf16>
    %7 = arith.extf %6 : vector<1x128xbf16> to vector<1x128xf32>
    %c16 = arith.constant 16 : index
    %c0_5 = arith.constant 0 : index
    %8 = vector.load %arg3[%c16, %c0_5] : memref<272x128xbf16, #tpu.memory_space<vmem>>, vector<128x128xbf16>
    %c144 = arith.constant 144 : index
    %c0_6 = arith.constant 0 : index
    %9 = vector.load %arg3[%c144, %c0_6] : memref<272x128xbf16, #tpu.memory_space<vmem>>, vector<128x128xbf16>
    %c0_7 = arith.constant 0 : index
    %c0_8 = arith.constant 0 : index
    %10 = vector.load %arg2[%c0_7, %c0_8] : memref<784x128xbf16, #tpu.memory_space<vmem>>, vector<784x128xbf16>
    %cst = arith.constant dense<0.000000e+00> : vector<8x128xf32>
    %11 = tpu.matmul %1, %10, %cst {dimension_numbers = #tpu.dot_dimension_numbers<[1], [0], [0], [1], [0, 0, 1, 1], [], []>} : vector<8x784xbf16>, vector<784x128xbf16>, vector<8x128xf32> -> vector<8x128xf32>
    %12 = vector.broadcast %3 : vector<1x128xf32> to vector<8x128xf32>
    %13 = arith.addf %11, %12 : vector<8x128xf32>
    %cst_9 = arith.constant 0.000000e+00 : f32
    %14 = vector.broadcast %cst_9 : f32 to vector<8x128xf32>
    %15 = arith.maximumf %13, %14 : vector<8x128xf32>
    %16 = arith.truncf %15 : vector<8x128xf32> to vector<8x128xbf16>
    %cst_10 = arith.constant dense<0.000000e+00> : vector<8x128xf32>
    %17 = tpu.matmul %16, %8, %cst_10 {dimension_numbers = #tpu.dot_dimension_numbers<[1], [0], [0], [1], [0, 0, 1, 1], [], []>} : vector<8x128xbf16>, vector<128x128xbf16>, vector<8x128xf32> -> vector<8x128xf32>
    %18 = vector.broadcast %5 : vector<1x128xf32> to vector<8x128xf32>
    %19 = arith.addf %17, %18 : vector<8x128xf32>
    %cst_11 = arith.constant 0.000000e+00 : f32
    %20 = vector.broadcast %cst_11 : f32 to vector<8x128xf32>
    %21 = arith.maximumf %19, %20 : vector<8x128xf32>
    %22 = arith.truncf %21 : vector<8x128xf32> to vector<8x128xbf16>
    %cst_12 = arith.constant dense<0.000000e+00> : vector<8x128xf32>
    %23 = tpu.matmul %22, %9, %cst_12 {dimension_numbers = #tpu.dot_dimension_numbers<[1], [0], [0], [1], [0, 0, 1, 1], [], []>} : vector<8x128xbf16>, vector<128x128xbf16>, vector<8x128xf32> -> vector<8x128xf32>
    %24 = vector.broadcast %7 : vector<1x128xf32> to vector<8x128xf32>
    %25 = arith.addf %23, %24 : vector<8x128xf32>
    %cst_13 = arith.constant dense<0xFF800000> : vector<8xf32>
    %26 = vector.multi_reduction <maximumf>, %25, %cst_13 [1] : vector<8x128xf32> to vector<8xf32>
    %27 = vector.shape_cast %26 : vector<8xf32> to vector<8x1xf32>
    %28 = vector.broadcast %27 : vector<8x1xf32> to vector<8x128xf32>
    %29 = arith.subf %25, %28 : vector<8x128xf32>
    %30 = math.exp %29 : vector<8x128xf32>
    %cst_14 = arith.constant dense<0.000000e+00> : vector<8xf32>
    %31 = vector.multi_reduction <add>, %30, %cst_14 [1] : vector<8x128xf32> to vector<8xf32>
    %32 = vector.shape_cast %31 : vector<8xf32> to vector<8x1xf32>
    %33 = vector.broadcast %32 : vector<8x1xf32> to vector<8x128xf32>
    %34 = arith.divf %30, %33 : vector<8x128xf32>
    %35 = arith.truncf %34 : vector<8x128xf32> to vector<8x128xbf16>
    %c0_15 = arith.constant 0 : index
    %c0_16 = arith.constant 0 : index
    %36 = vector.load %arg4[%c0_15, %c0_16] : memref<8x128xbf16, #tpu.memory_space<vmem>>, vector<8x128xbf16>
    tpu.vector_store %arg4[%c0_15, %c0_16], %35 {strides = array<i32>} : memref<8x128xbf16, #tpu.memory_space<vmem>>, vector<8x128xbf16>,
    return
  }
  func.func @transform_0(%arg0: i32) -> (i32, i32) {
    %c0_i32 = arith.constant 0 : i32
    %c0_i32_0 = arith.constant 0 : i32
    return %arg0, %c0_i32 : i32, i32
  }
  func.func @transform_1(%arg0: i32) -> (i32, i32) {
    %c0_i32 = arith.constant 0 : i32
    %c0_i32_0 = arith.constant 0 : i32
    %c0_i32_1 = arith.constant 0 : i32
    return %c0_i32, %c0_i32_0 : i32, i32
  }
  func.func @transform_2(%arg0: i32) -> (i32, i32) {
    %c0_i32 = arith.constant 0 : i32
    %c0_i32_0 = arith.constant 0 : i32
    %c0_i32_1 = arith.constant 0 : i32
    return %c0_i32, %c0_i32_0 : i32, i32
  }
  func.func @transform_3(%arg0: i32) -> (i32, i32) {
    %c0_i32 = arith.constant 0 : i32
    %c0_i32_0 = arith.constant 0 : i32
    return %arg0, %c0_i32 : i32, i32
  }
}

</mosaic_0001>

<bundles_post_ra>
// kernel: my_module_forward.1
= control target key start
LH: loop header
LB: loop body
LE: loop exit
PB: predicated region body
PF: predicated region fallthrough
CT: control target
= control target key end

     0   :  { %8 = vsyncpa [#allocation3], 0  ;;  %s1308_s0 = inlined_call_operand.hbm [shape: f32[8,784], index: 0, kind: input, shape index: {}]   ;;  %s1309_s1 = inlined_call_operand.hbm [shape: bf16[784,128], index: 1, kind: input, shape index: {}]   ;;  %s1310_s2 = inlined_call_operand.hbm [shape: bf16[272,128], index: 2, kind: input, shape index: {}]   ;;  %s1311_s3 = inlined_call_operand.vmem [shape: bf16[8,128], index: 3, kind: output, shape index: {}]  }
   0x1   :  { %9 = vsyncpa [#allocation5], 0  ;;  %s1213_s12 = smov [#allocation4]   ;;  %s1143_s16 = scalar_lea.hbm %s1309_s1, 6272 }
   0x2   :  { %s25_s13 = sshll.u32 %s1213_s12, 4  ;;  %p1144_p0 = scmp.ne.s32.totalorder %s1309_s1, %s1143_s16  ;;  %s26_s13 = int_to_ptr.vmem [resolvable:$true] %s25_s13 }
   0x3   :  { %p1147_p1 = scmp.lt.u32.totalorder %s1143_s16, %s1309_s1 }
   0x5   :  { %p1149_p2 = pnand %p1147_p1, %p1144_p0 }
   0x7   :  { %1152 = shalt.err (!%p1149_p2)
}
   0x8   :  { %s1153_s21 = scalar_lea.vmem %s26_s13, 6272  ;;  %p1158_p4 = scmp.lt.s32.totalorder %s26_s13, %s26_s13 }
   0x9   :  { %p1154_p3 = scmp.ne.s32.totalorder %s26_s13, %s1153_s21  ;;  %p1159_p5 = scmp.lt.s32.totalorder %s1153_s21, %s1153_s21 }
   0xb   :  { %p1160_p6 = por %p1159_p5, %p1158_p4 }
   0xd   :  { %p1161_p7 = pnand %p1160_p6, %p1154_p3 }
   0xf   :  { %1164 = shalt.err (!%p1161_p7)
}
  0x10   :  { %s1214_s22 = smov 64   ;;  %s1215_s23 = smov 4  }
  0x11   :  { %31 = dma.hbm_to_vmem [thread:$0]  %s1309_s1, 6272, %s26_s13, [#allocation5], %s1214_s22, %s1214_s22, %s1215_s23  }
  0x12   :  { %s1216_s26 = smov [#allocation2]   ;;  %s1217_s28 = smov [#allocation6]  }
  0x13   :  { %s16_s27 = sshll.u32 %s1216_s26, 4  ;;  %s37_s29 = sshll.u32 %s1217_s28, 4  ;;  %s17_s27 = int_to_ptr.vmem [resolvable:$true] %s16_s27  ;;  %s38_s29 = int_to_ptr.vmem [resolvable:$true] %s37_s29 }
  0x14   :  { %s1165_s5 = scalar_lea.hbm %s1308_s0, 896 }
  0x15   :  { %p1166_p8 = scmp.ne.s32.totalorder %s1308_s0, %s1165_s5  ;;  %p1169_p9 = scmp.lt.u32.totalorder %s1165_s5, %s1308_s0 }
  0x17   :  { %p1171_p10 = pnand %p1169_p9, %p1166_p8 }
  0x19   :  { %1174 = shalt.err (!%p1171_p10)
}
  0x1a   :  { %s1175_s1 = scalar_lea.vmem %s17_s27, 896  ;;  %p1180_p12 = scmp.lt.s32.totalorder %s17_s27, %s17_s27 }
  0x1b   :  { %p1176_p11 = scmp.ne.s32.totalorder %s17_s27, %s1175_s1  ;;  %p1181_p13 = scmp.lt.s32.totalorder %s1175_s1, %s1175_s1 }
  0x1d   :  { %p1182_p0 = por %p1181_p13, %p1180_p12 }
  0x1f   :  { %p1183_p1 = pnand %p1182_p0, %p1176_p11 }
  0x21   :  { %1186 = shalt.err (!%p1183_p1)
}
  0x22   :  { %19 = dma.hbm_to_vmem [thread:$0]  %s1308_s0, 896, %s17_s27, [#allocation3]  }
  0x23   :  { %s1187_s14 = scalar_lea.hbm %s1310_s2, 2176 }
  0x24   :  { %p1188_p2 = scmp.ne.s32.totalorder %s1310_s2, %s1187_s14  ;;  %p1191_p3 = scmp.lt.u32.totalorder %s1187_s14, %s1310_s2 }
  0x26   :  { %p1193_p4 = pnand %p1191_p3, %p1188_p2 }
  0x28   :  { %1196 = shalt.err (!%p1193_p4)
}
  0x29   :  { %s1197_s19 = scalar_lea.vmem %s38_s29, 2176  ;;  %p1202_p6 = scmp.lt.s32.totalorder %s38_s29, %s38_s29 }
  0x2a   :  { %p1198_p5 = scmp.ne.s32.totalorder %s38_s29, %s1197_s19  ;;  %p1203_p7 = scmp.lt.s32.totalorder %s1197_s19, %s1197_s19 }
  0x2c   :  { %p1204_p8 = por %p1203_p7, %p1202_p6 }
  0x2e   :  { %p1205_p9 = pnand %p1204_p8, %p1198_p5 }
  0x30   :  { %1208 = shalt.err (!%p1205_p9)
}
  0x31   :  { %43 = dma.hbm_to_vmem [thread:$0]  %s1310_s2, 2176, %s38_s29, [#allocation5], %s1214_s22, %s1214_s22, %s1215_s23  }
  0x32   :  { %1209 = dma.done.wait [#allocation3], 896  }
  0x33   :  { %1210 = vsyncadd [#allocation3], 4294966400 }
  0x34   :  { %1211 = dma.done.wait [#allocation5], 8448  }
  0x35   :  { %1212 = vsyncadd [#allocation5], 4294958848  ;;  %v1074_v0 = vld [vmem:[#allocation4 + $0x40] sm:$0xff]   ;;  %v1078_v4 = vld [vmem:[#allocation4 + $0x48] sm:$0xff]   ;;  %v1218_v44 = vmov 0.0   ;;  %vm1219_vm0 = vmmov 0  }
  0x36   :  { %v1075_v1 = vld [vmem:[#allocation4] sm:$0xff]   ;;  %935 = vmatprep.subr.bf16.mxu0 %v1074_v0  ;;  %v1079_v5 = vld [vmem:[#allocation4 + $0x8] sm:$0xff]   ;;  %v1082_v8 = vld [vmem:[#allocation4 + $0x50] sm:$0xff]   ;;  %vm500_vm1 = vcmask 130048  }
  0x37   :  { %v1076_v2 = vld [vmem:[#allocation4 + $0xc0] sm:$0xff]   ;;  %936 = vmatpush3.bf16.msra.mxu0 %v1075_v1  ;;  %v1080_v6 = vld [vmem:[#allocation4 + $0xc8] sm:$0xff]   ;;  %v1083_v9 = vld [vmem:[#allocation4 + $0x10] sm:$0xff]  }
  0x38   :  { %v1077_v3 = vld [vmem:[#allocation4 + $0x80] sm:$0xff]   ;;  %957 = vmatprep.subr.bf16.mxu1 %v1076_v2  ;;  %937 = vmatprep.subr.bf16.mxu0 %v1078_v4  ;;  %v1081_v7 = vld [vmem:[#allocation4 + $0x88] sm:$0xff]   ;;  %v1084_v10 = vld [vmem:[#allocation4 + $0xd0] sm:$0xff]  }
  0x39   :  { %958 = vmatpush3.bf16.msra.mxu1 %v1077_v3  ;;  %v1085_v11 = vld [vmem:[#allocation4 + $0x90] sm:$0xff]   ;;  %v1086_v12 = vld [vmem:[#allocation4 + $0x58] sm:$0xff]   ;;  %v1090_v16 = vld [vmem:[#allocation4 + $0x60] sm:$0xff]  }
  0x3a   :  { %959 = vmatprep.subr.bf16.mxu1 %v1080_v6  ;;  %v1087_v13 = vld [vmem:[#allocation4 + $0x18] sm:$0xff]   ;;  %v1091_v17 = vld [vmem:[#allocation4 + $0x20] sm:$0xff]   ;;  %v1094_v20 = vld [vmem:[#allocation4 + $0x68] sm:$0xff]  }
  0x3b   :  { %938 = vmatpush3.bf16.msra.mxu0 %v1079_v5  ;;  %v1088_v14 = vld [vmem:[#allocation4 + $0xd8] sm:$0xff]   ;;  %v1092_v18 = vld [vmem:[#allocation4 + $0xe0] sm:$0xff]   ;;  %v1095_v21 = vld [vmem:[#allocation4 + $0x28] sm:$0xff]  }
  0x3c   :  { %939 = vmatprep.subr.bf16.mxu0 %v1082_v8  ;;  %v1089_v15 = vld [vmem:[#allocation4 + $0x98] sm:$0xff]   ;;  %v1093_v19 = vld [vmem:[#allocation4 + $0xa0] sm:$0xff]   ;;  %v1096_v22 = vld [vmem:[#allocation4 + $0xe8] sm:$0xff]  }
  0x3d   :  { %960 = vmatpush3.bf16.msra.mxu1 %v1081_v7  ;;  %v1097_v23 = vld [vmem:[#allocation4 + $0xa8] sm:$0xff]   ;;  %v1098_v24 = vld [vmem:[#allocation4 + $0x70] sm:$0xff]   ;;  %v1102_v28 = vld [vmem:[#allocation4 + $0x78] sm:$0xff]  }
  0x3e   :  { %961 = vmatprep.subr.bf16.mxu1 %v1084_v10  ;;  %v1099_v25 = vld [vmem:[#allocation4 + $0x30] sm:$0xff]   ;;  %v1103_v29 = vld [vmem:[#allocation4 + $0x38] sm:$0xff]   ;;  %v54_v34 = vld [vmem:[#allocation2] sm:$0xff] }
  0x3f   :  { %940 = vmatpush3.bf16.msra.mxu0 %v1083_v9  ;;  %v1100_v26 = vld [vmem:[#allocation4 + $0xf0] sm:$0xff]   ;;  %v1104_v30 = vld [vmem:[#allocation4 + $0xf8] sm:$0xff]   ;;  %v61_v35 = vpack.c.bf16 %v54_v34, %v54_v34  ;;  %v1106_v36 = vld [vmem:[#allocation4 + $0x140] sm:$0xff]  }
  0x40   :  { %941 = vmatprep.subr.bf16.mxu0 %v1086_v12  ;;  %v1101_v27 = vld [vmem:[#allocation4 + $0xb0] sm:$0xff]   ;;  %v1105_v33 = vld [vmem:[#allocation4 + $0xb8] sm:$0xff]   ;;  %v57_v37 = vld [vmem:[#allocation2 + $0x18] sm:$0xff] }
  0x41   :  { %962 = vmatpush3.bf16.msra.mxu1 %v1085_v11  ;;  %v55_v31 = vld [vmem:[#allocation2 + $0x8] sm:$0xff]  ;;  %v64_v38 = vpack.c.bf16 %v57_v37, %v57_v37  ;;  %v1107_v39 = vld [vmem:[#allocation4 + $0x100] sm:$0xff]   ;;  %v56_v40 = vld [vmem:[#allocation2 + $0x10] sm:$0xff] }
  0x42   :  { %963 = vmatprep.subr.bf16.mxu1 %v1088_v14  ;;  %v62_v32 = vpack.c.bf16 %v55_v31, %v55_v31  ;;  %v63_v41 = vpack.c.bf16 %v56_v40, %v56_v40  ;;  %v1108_v42 = vld [vmem:[#allocation4 + $0x148] sm:$0xff]   ;;  %v1110_v45 = vld [vmem:[#allocation4 + $0x150] sm:$0xff]   ;;  %v1112_v47 = vld [vmem:[#allocation4 + $0x158] sm:$0xff]   ;;  %v202_v14 = vlaneseq }
  0x43   :  { %942 = vmatpush3.bf16.msra.mxu0 %v1087_v13  ;;  %576 = vmatprep.mubr.bf16.mxu1 %v64_v38  ;;  %v1109_v43 = vld [vmem:[#allocation4 + $0x108] sm:$0xff]   ;;  %v1111_v46 = vld [vmem:[#allocation4 + $0x110] sm:$0xff]   ;;  %v1113_v48 = vld [vmem:[#allocation4 + $0x118] sm:$0xff]  }
  0x44   :  { %943 = vmatprep.subr.bf16.mxu0 %v1090_v16  ;;  %536 = vmatprep.mubr.bf16.mxu0 %v62_v32  ;;  %v1114_v49 = vld [vmem:[#allocation4 + $0x160] sm:$0xff]   ;;  %v1116_v51 = vld [vmem:[#allocation4 + $0x168] sm:$0xff]   ;;  %v59_v54 = vld [vmem:[#allocation2 + $0x28] sm:$0xff] }
  0x45   :  { %964 = vmatpush3.bf16.msra.mxu1 %v1089_v15  ;;  %v1115_v50 = vld [vmem:[#allocation4 + $0x120] sm:$0xff]   ;;  %v1117_v52 = vld [vmem:[#allocation4 + $0x128] sm:$0xff]   ;;  %v1118_v55 = vld [vmem:[#allocation4 + $0x170] sm:$0xff]   ;;  %v66_v56 = vpack.c.bf16 %v59_v54, %v59_v54  ;;  %v203_v15 = vshrl.u32 %v202_v14, 7 }
  0x46   :  { %965 = vmatprep.subr.bf16.mxu1 %v1092_v18  ;;  %v1122_v53 = vld [vmem:[#allocation4 + $0x180] sm:$0xff]   ;;  %v60_v57 = vld [vmem:[#allocation2 + $0x30] sm:$0xff]  ;;  %v1119_v59 = vld [vmem:[#allocation4 + $0x130] sm:$0xff]  }
  0x47   :  { %944 = vmatpush3.bf16.msra.mxu0 %v1091_v17  ;;  %v67_v58 = vpack.c.bf16 %v60_v57, %v60_v57  ;;  %v1120_v60 = vld [vmem:[#allocation4 + $0x178] sm:$0xff]   ;;  %v58_v62 = vld [vmem:[#allocation2 + $0x20] sm:$0xff]  ;;  %v1123_v0 = vld [vmem:[#allocation6 + $0x8] sm:$0xff]   ;;  %v204_v18 = vsub.s32 0, %v203_v15 }
  0x48   :  { %945 = vmatprep.subr.bf16.mxu0 %v1094_v20  ;;  %v1121_v61 = vld [vmem:[#allocation4 + $0x138] sm:$0xff]   ;;  %v65_v63 = vpack.c.bf16 %v58_v62, %v58_v62  ;;  %v1125_v2 = vld [vmem:[#allocation6 + $0x18] sm:$0xff]   ;;  %v1126_v3 = vld [vmem:[#allocation6 + $0x20] sm:$0xff]  }
  0x49   :  { %966 = vmatpush3.bf16.msra.mxu1 %v1093_v19  ;;  %v1124_v1 = vld [vmem:[#allocation6 + $0x10] sm:$0xff]   ;;  %v1127_v4 = vld [vmem:[#allocation6 + $0x28] sm:$0xff]   ;;  %v1129_v6 = vld [vmem:[#allocation6 + $0x38] sm:$0xff]  }
  0x4a   :  { %967 = vmatprep.subr.bf16.mxu1 %v1096_v22  ;;  %v1128_v5 = vld [vmem:[#allocation6 + $0x30] sm:$0xff]   ;;  %v1130_v7 = vld [vmem:[#allocation6 + $0x40] sm:$0xff]   ;;  %v1131_v8 = vld [vmem:[#allocation6 + $0x48] sm:$0xff]  }
  0x4b   :  { %946 = vmatpush3.bf16.msra.mxu0 %v1095_v21  ;;  %v1132_v9 = vld [vmem:[#allocation6 + $0x50] sm:$0xff]   ;;  %v1133_v10 = vld [vmem:[#allocation6 + $0x58] sm:$0xff]   ;;  %v1134_v11 = vld [vmem:[#allocation6 + $0x60] sm:$0xff]  }
  0x4c   :  { %947 = vmatprep.subr.bf16.mxu0 %v1098_v24  ;;  %v1135_v12 = vld [vmem:[#allocation6 + $0x68] sm:$0xff]   ;;  %v1136_v13 = vld [vmem:[#allocation6 + $0x70] sm:$0xff]   ;;  %v68_v16 = vld [vmem:[#allocation6] sm:$0x1] }
  0x4d   :  { %968 = vmatpush3.bf16.msra.mxu1 %v1097_v23  ;;  %v69_v17 = vunpack.c.l.bf16 %v68_v16  ;;  %v70_v57 = vld [vmem:[#allocation6] sm:$0x2] }
  0x4e   :  { %969 = vmatprep.subr.bf16.mxu1 %v1100_v26 }
  0x4f   :  { %948 = vmatpush3.bf16.msra.mxu0 %v1099_v25  ;;  %v205_v20 = vrot.slane %v69_v17, %v204_v18 }
  0x50   :  { %949 = vmatprep.subr.bf16.mxu0 %v1102_v28 }
  0x51   :  { %970 = vmatpush3.bf16.msra.mxu1 %v1101_v27 }
  0x52   :  { %971 = vmatprep.subr.bf16.mxu1 %v1104_v30 }
  0x53   :  { %950 = vmatpush3.bf16.msra.mxu0 %v1103_v29 }
  0x54   :  { %979 = vmatprep.subr.bf16.mxu0 %v1106_v36 }
  0x55   :  { %972 = vmatpush3.bf16.msra.mxu1 %v1105_v33 }
  0x56   :  { %537 = vmatmul.mubr.bf16.vlgmr.msra.gmra.mrb[0].mxu0 %v61_v35  ;;  %1021 = vmatprep.subr.bf16.mxu1 %v1218_v44 }
  0x57   :  { %980 = vmatpush3.bf16.msra.mxu0 %v1107_v39  ;;  %616 = vmatprep.mubr.bf16.mxu0 %v66_v56 }
  0x58   :  { %577 = vmatmul.mubr.bf16.vlgmr.msra.gmra.mrb[0].mxu1 %v63_v41  ;;  %981 = vmatprep.subr.bf16.mxu0 %v1108_v42 }
  0x59   :  { %1023 = vmatprep.mubr.msk.bf16.mxu1 %vm1219_vm0, %v1218_v44  ;;  %1022 = vmatpush3.bf16.msra.mxu1 %v1122_v53 }
  0x5a   :  { %1027 = vmatprep.subr.bf16.mxu1 %v1218_v44 }
  0x5b   :  { %982 = vmatpush3.bf16.msra.mxu0 %v1109_v43 }
  0x5c   :  { %983 = vmatprep.subr.bf16.mxu0 %v1110_v45 }
  0x5f   :  { %984 = vmatpush3.bf16.msra.mxu0 %v1111_v46  ;;  %v1137_v46 = vld [vmem:[#allocation6 + $0x78] sm:$0xff]  }
  0x60   :  { %985 = vmatprep.subr.bf16.mxu0 %v1112_v47  ;;  %1024 = vmatmul.mubr.msk.bf16.vlgmr.msra.gmra.mrb[4].mxu1 %vm500_vm1, %v67_v58  ;;  %v1138_v47 = vld [vmem:[#allocation6 + $0x80] sm:$0xff]   ;;  %v71_v58 = vunpack.c.l.bf16 %v70_v57 }
  0x61   :  { %1043 = vmatprep.mubr.msk.bf16.mxu1 %vm1219_vm0, %v1218_v44  ;;  %1028 = vmatpush3.bf16.msra.mxu1 %v1123_v0 }
  0x62   :  { %1029 = vmatprep.subr.bf16.mxu1 %v1218_v44 }
  0x63   :  { %986 = vmatpush3.bf16.msra.mxu0 %v1113_v48  ;;  %v668_v48 = vsub.s32 1, %v203_v15 }
  0x64   :  { %987 = vmatprep.subr.bf16.mxu0 %v1114_v49 }
  0x65   :  { %1030 = vmatpush3.bf16.msra.mxu1 %v1124_v1  ;;  %v669_v49 = vrot.slane %v69_v17, %v668_v48 }
  0x66   :  { %1031 = vmatprep.subr.bf16.mxu1 %v1218_v44 }
  0x67   :  { %988 = vmatpush3.bf16.msra.mxu0 %v1115_v50 }
  0x68   :  { %989 = vmatprep.subr.bf16.mxu0 %v1116_v51 }
  0x69   :  { %1032 = vmatpush3.bf16.msra.mxu1 %v1125_v2 }
  0x6a   :  { %1033 = vmatprep.subr.bf16.mxu1 %v1218_v44 }
  0x6b   :  { %990 = vmatpush3.bf16.msra.mxu0 %v1117_v52 }
  0x6c   :  { %991 = vmatprep.subr.bf16.mxu0 %v1118_v55 }
  0x6d   :  { %1034 = vmatpush3.bf16.msra.mxu1 %v1126_v3 }
  0x6e   :  { %1035 = vmatprep.subr.bf16.mxu1 %v1218_v44 }
  0x6f   :  { %992 = vmatpush3.bf16.msra.mxu0 %v1119_v59  ;;  %v762_v59 = vsub.s32 2, %v203_v15 }
  0x70   :  { %993 = vmatprep.subr.bf16.mxu0 %v1120_v60 }
  0x71   :  { %1036 = vmatpush3.bf16.msra.mxu1 %v1127_v4  ;;  %v763_v60 = vrot.slane %v71_v58, %v762_v59 }
  0x72   :  { %1037 = vmatprep.subr.bf16.mxu1 %v1218_v44 }
  0x73   :  { %994 = vmatpush3.bf16.msra.mxu0 %v1121_v61 }
  0x74   :  { %1047 = vmatprep.subr.bf16.mxu0 %v1218_v44 }
  0x75   :  { %1038 = vmatpush3.bf16.msra.mxu1 %v1128_v5 }
  0x76   :  { %617 = vmatmul.mubr.bf16.vlgmr.msra.gmra.mrb[4].mxu0 %v65_v63  ;;  %1039 = vmatprep.subr.bf16.mxu1 %v1218_v44 }
  0x77   :  { %1063 = vmatprep.mubr.msk.bf16.mxu0 %vm1219_vm0, %v1218_v44  ;;  %1048 = vmatpush3.bf16.msra.mxu0 %v1131_v8 }
  0x78   :  { %1049 = vmatprep.subr.bf16.mxu0 %v1218_v44 }
  0x79   :  { %1040 = vmatpush3.bf16.msra.mxu1 %v1129_v6 }
  0x7a   :  { %1041 = vmatprep.subr.bf16.mxu1 %v1218_v44 }
  0x7b   :  { %1050 = vmatpush3.bf16.msra.mxu0 %v1132_v9 }
  0x7c   :  { %1051 = vmatprep.subr.bf16.mxu0 %v1218_v44 }
  0x7d   :  { %1042 = vmatpush3.bf16.msra.mxu1 %v1130_v7 }
  0x7f   :  { %1052 = vmatpush3.bf16.msra.mxu0 %v1133_v10 }
  0x80   :  { %1053 = vmatprep.subr.bf16.mxu0 %v1218_v44 }
  0x83   :  { %1054 = vmatpush3.bf16.msra.mxu0 %v1134_v11 }
  0x84   :  { %1055 = vmatprep.subr.bf16.mxu0 %v1218_v44 }
  0x87   :  { %1056 = vmatpush3.bf16.msra.mxu0 %v1135_v12 }
  0x88   :  { %1057 = vmatprep.subr.bf16.mxu0 %v1218_v44 }
  0x8b   :  { %1058 = vmatpush3.bf16.msra.mxu0 %v1136_v13 }
  0x8c   :  { %1059 = vmatprep.subr.bf16.mxu0 %v1218_v44 }
  0x8f   :  { %1060 = vmatpush3.bf16.msra.mxu0 %v1137_v46 }
  0x90   :  { %1061 = vmatprep.subr.bf16.mxu0 %v1218_v44 }
  0x93   :  { %1062 = vmatpush3.bf16.msra.mxu0 %v1138_v47 }
 0x129   :  { %v951_v19 = vpop.f32.mrb[0].mxu0 }
 0x12a   :  { %v952_v21 = vpop.f32.mrb[1].mxu0 }
 0x12b   :  { %v953_v22 = vadd.f32 %v952_v21, %v951_v19  ;;  %v954_v23 = vpop.f32.mrb[2].mxu0  ;;  %v973_v24 = vpop.f32.mrb[0].mxu1 }
 0x12c   :  { %v955_v25 = vpop.f32.mrb[3].mxu0  ;;  %v974_v27 = vpop.f32.mrb[1].mxu1 }
 0x12d   :  { %v539_v26 = vadd.f32 %v953_v22, %v205_v20  ;;  %v975_v28 = vadd.f32 %v974_v27, %v973_v24  ;;  %v976_v29 = vpop.f32.mrb[2].mxu1 }
 0x12e   :  { %v977_v30 = vpop.f32.mrb[3].mxu1 }
 0x12f   :  { %v579_v31 = vadd.f32 %v975_v28, %v539_v26 }
 0x133   :  { %v658_v32 = vpop.f32.mrb[4].mxu1 }
 0x134   :  { %v1025_v33 = vpop.f32.mrb[5].mxu1 }
 0x135   :  { %v661_v34 = vpop.f32.mrb[6].mxu1 }
 0x136   :  { %v1026_v35 = vpop.f32.mrb[7].mxu1 }
 0x149   :  { %v995_v36 = vpop.f32.mrb[4].mxu0 }
 0x14a   :  { %v996_v37 = vpop.f32.mrb[5].mxu0 }
 0x14b   :  { %v997_v38 = vadd.f32 %v996_v37, %v995_v36  ;;  %v998_v39 = vpop.f32.mrb[6].mxu0 }
 0x14c   :  { %v999_v40 = vpop.f32.mrb[7].mxu0 }
 0x14d   :  { %v619_v41 = vadd.f32 %v997_v38, %v579_v31 }
 0x14f   :  { %v659_v42 = vadd.f32 %v658_v32, %v619_v41 }
 0x151   :  { %v664_v43 = vmax.f32 %v659_v42, 0.0 }
 0x153   :  { %v665_v45 = vpack.c.bf16 %v664_v43, %v664_v43 }
 0x155   :  { %1044 = vmatmul.mubr.bf16.vlgmr.msra.gmra.mrb[8].mxu1 %v665_v45 }
 0x228   :  { %v752_v50 = vpop.f32.mrb[8].mxu1 }
 0x229   :  { %v753_v51 = vadd.f32 %v752_v50, %v669_v49  ;;  %v1045_v52 = vpop.f32.mrb[9].mxu1 }
 0x22a   :  { %v755_v53 = vpop.f32.mrb[10].mxu1 }
 0x22b   :  { %v758_v54 = vmax.f32 %v753_v51, 0.0  ;;  %v1046_v55 = vpop.f32.mrb[11].mxu1 }
 0x22d   :  { %v759_v56 = vpack.c.bf16 %v758_v54, %v758_v54 }
 0x22f   :  { %1064 = vmatmul.mubr.bf16.vlgmr.msra.gmra.mrb[8].mxu0 %v759_v56 }
 0x302   :  { %v846_v61 = vpop.f32.mrb[8].mxu0 }
 0x303   :  { %v847_v62 = vadd.f32 %v846_v61, %v763_v60  ;;  %v1065_v63 = vpop.f32.mrb[9].mxu0 }
 0x304   :  { %v849_v44 = vpop.f32.mrb[10].mxu0 }
 0x305   :  { %852 = vmax.xlane.f32.xlu0 %v847_v62  ;;  %v1066_v0 = vpop.f32.mrb[11].mxu0 }
 0x392   :  { %v853_v1 = vpop.xlane.xlu0 %852 }
 0x393   :  { %v854_v2 = vsub.f32 %v847_v62, %v853_v1 }
 0x395   :  { %v855_v3 = vmul.f32 1.442695, %v854_v2 }
 0x397   :  { %1139 = vpow2.f32 %v855_v3 }
 0x3a1   :  { %v1140_v4 = vpop.eup %1139 }
 0x3a2   :  { %857 = vadd.xlane.f32.xlu0 %v1140_v4 }
 0x42f   :  { %v858_v5 = vpop.xlane.xlu0 %857 }
 0x430   :  { %1141 = vrcp.f32 %v858_v5 }
 0x43a   :  { %v1142_v6 = vpop.eup %1141 }
 0x43b   :  { %v860_v7 = vmul.f32 %v1142_v6, %v1140_v4 }
 0x43d   :  { %v861_v8 = vpack.c.bf16 %v860_v7, %v860_v7 }
 0x43f   :  { %862 = vst [vmem:[%s1311_s3] sm:$0xf] %v861_v8 }
 0x440   :  { %867 = vsyncpa [#allocation3], 1 }
 0x441   :  { %868 = vsyncpa [#allocation5], 1 }

</bundles_post_ra>
